<compile_context>
chip_gen: v5e
topology: v5e:2x2
jax: 0.10.0
libtpu: 0.0.40
codegen_flags: <defaults>
</compile_context>

<pallas_src>
import jax
import jax.numpy as jnp
from jax.experimental import pallas as pl
from jax.experimental.pallas import tpu as pltpu


def _tpu_info():
    try:
        return pltpu.get_tpu_info()
    except Exception:
        return None


def _vmem_capacity_bytes():
    info = _tpu_info()
    cap = getattr(info, "vmem_capacity_bytes", None) if info is not None else None
    if isinstance(cap, int) and cap > 0:
        return cap
    return 64 << 20  # conservative: v7x per-TC VMEM


def _num_tensorcores():
    info = _tpu_info()
    if info is not None:
        for name in ("num_cores", "num_tensorcores", "core_count", "num_cores_per_chip"):
            v = getattr(info, name, None)
            if isinstance(v, int) and v > 0:
                return v
    return 1  # conservative fallback: single-TC (v5e/v6e) schedule


def _pad_up(x, m):
    return -(-x // m) * m


def _padded_block_bytes(shape, itemsize):
    """VMEM footprint of a block after (8, 128) sublane/lane tiling."""
    s = list(shape)
    s[-1] = _pad_up(s[-1], 128)
    if len(s) >= 2:
        s[-2] = _pad_up(s[-2], 8)
    n = 1
    for d in s:
        n *= d
    return n * itemsize


def _to_colour_kernel(x_ref, o_ref):
    # x_ref: (b, th, W) block ; o_ref: (b, th, 3W) block
    w = x_ref.shape[-1]
    v = (x_ref[...] * 255.0).astype(o_ref.dtype)
    # Tile-repeat along the last axis (torch .repeat(1, 1, 1, 3)) via three
    # static slice stores; same bytes either way, but no 3x-wide temporary and
    # the stores are lane-aligned whenever W is a multiple of 128.
    o_ref[:, :, 0 * w:1 * w] = v
    o_ref[:, :, 1 * w:2 * w] = v
    o_ref[:, :, 2 * w:3 * w] = v


def to_colour(x, *, target_block_bytes=4 << 20):
    """x: (N, C, H, W) float array -> (N, C, H, 3*W)."""
    n, c, h, w = x.shape
    nc = n * c
    itemsize = jnp.dtype(x.dtype).itemsize

    vmem_cap = _vmem_capacity_bytes()
    ncores = _num_tensorcores()
    # Usable VMEM ceiling: half physical, capped at 48 MiB (leave compiler scratch).
    ceiling = min(vmem_cap // 2, 48 << 20)
    # Budget for ONE (input + output) block pair; double-buffered pair must fit.
    pair_budget = max(64 << 10, min(target_block_bytes, (ceiling - (2 << 20)) // 2))

    # One (input + output) row of one plane, padded to (8, 128) VMEM tiling.
    per_row_bytes = (_pad_up(w, 128) + _pad_up(3 * w, 128)) * itemsize
    rows_target = max(8, pair_budget // per_row_bytes)

    if rows_target >= h:
        # Whole planes per block; batch several planes to amortize per-step cost.
        th = h
        b = int(min(nc, max(1, rows_target // h)))
    else:
        # H tiling keeps large planes inside VMEM (esp. v7x's 64 MiB per TC).
        b = 1
        th = int(min(h, max(8, (rows_target // 8) * 8)))  # multiple of 8 (sublane rule)

    grid_h = pl.cdiv(h, th)
    grid_nc = pl.cdiv(nc, b)

    # Balance the plane axis across TensorCores (v7x) when it is the only grid
    # axis: aim for an even multiple of the core count, >= 2 steps per core.
    if ncores > 1 and grid_h == 1 and nc >= 2 * ncores:
        steps = max(grid_nc, 2 * ncores)
        steps = min(pl.cdiv(steps, ncores) * ncores, nc)
        b = pl.cdiv(nc, steps)
        grid_nc = pl.cdiv(nc, b)

    in_block = (b, th, w)
    out_block = (b, th, 3 * w)

    # vmem_limit tied to the actual (padded, double-buffered) block footprint.
    needed = 2 * (_padded_block_bytes(in_block, itemsize)
                  + _padded_block_bytes(out_block, itemsize)) + (2 << 20)
    vmem_limit = int(max(needed, 16 << 20))

    x_flat = x.reshape(nc, h, w)
    out_flat = pl.pallas_call(
        _to_colour_kernel,
        out_shape=jax.ShapeDtypeStruct((nc, h, 3 * w), x.dtype),
        grid=(grid_nc, grid_h),
        in_specs=[pl.BlockSpec(in_block, lambda i, j: (i, j, 0))],
        out_specs=pl.BlockSpec(out_block, lambda i, j: (i, j, 0)),
        compiler_params=pltpu.CompilerParams(
            dimension_semantics=("parallel", "parallel"),
            vmem_limit_bytes=vmem_limit,
        ),
    )(x_flat)

    return out_flat.reshape(n, c, h, 3 * w)


if __name__ == "__main__":
    key = jax.random.PRNGKey(0)
    x = jax.random.uniform(key, (2, 4, 16, 16), dtype=jnp.float32)

    y = to_colour(x)
    jax.block_until_ready(y)

    # Reference check against plain-JAX equivalent of the PyTorch forward.
    ref = jnp.tile(x * 255.0, (1, 1, 1, 3))
    assert y.shape == (2, 4, 16, 48), y.shape
    assert jnp.allclose(y, ref), "mismatch vs reference"

    print("KERNEL_OK")
</pallas_src>

<mosaic_0001>
module attributes {stable_mosaic.version = 11 : i64} {
  func.func @_to_colour_kernel(%arg0: i32, %arg1: i32, %arg2: memref<8x16x16xf32, #tpu.memory_space<vmem>>, %arg3: memref<8x16x48xf32, #tpu.memory_space<vmem>>) attributes {dimension_semantics = [#tpu.dimension_semantics<parallel>, #tpu.dimension_semantics<parallel>], iteration_bounds = array<i64: 1, 1>, scalar_prefetch = 0 : i64, scratch_operands = 0 : i64, tpu.core_type = #tpu.core_type<tc>, window_params = [{transform_indices = @transform_0, window_bounds = array<i64: 8, 16, 16>}, {transform_indices = @transform_1, window_bounds = array<i64: 8, 16, 48>}]} {
    %c0 = arith.constant 0 : index
    %c0_0 = arith.constant 0 : index
    %c0_1 = arith.constant 0 : index
    %0 = vector.load %arg2[%c0, %c0_0, %c0_1] : memref<8x16x16xf32, #tpu.memory_space<vmem>>, vector<8x16x16xf32>
    %cst = arith.constant 2.550000e+02 : f32
    %1 = vector.broadcast %cst : f32 to vector<8x16x16xf32>
    %2 = arith.mulf %0, %1 : vector<8x16x16xf32>
    %c0_2 = arith.constant 0 : index
    %c0_3 = arith.constant 0 : index
    %c0_4 = arith.constant 0 : index
    %3 = vector.load %arg3[%c0_2, %c0_3, %c0_4] : memref<8x16x48xf32, #tpu.memory_space<vmem>>, vector<8x16x16xf32>
    tpu.vector_store %arg3[%c0_2, %c0_3, %c0_4], %2 {strides = array<i32>} : memref<8x16x48xf32, #tpu.memory_space<vmem>>, vector<8x16x16xf32>,
    %c0_5 = arith.constant 0 : index
    %c0_6 = arith.constant 0 : index
    %c16 = arith.constant 16 : index
    %4 = vector.load %arg3[%c0_5, %c0_6, %c16] : memref<8x16x48xf32, #tpu.memory_space<vmem>>, vector<8x16x16xf32>
    tpu.vector_store %arg3[%c0_5, %c0_6, %c16], %2 {strides = array<i32>} : memref<8x16x48xf32, #tpu.memory_space<vmem>>, vector<8x16x16xf32>,
    %c0_7 = arith.constant 0 : index
    %c0_8 = arith.constant 0 : index
    %c32 = arith.constant 32 : index
    %5 = vector.load %arg3[%c0_7, %c0_8, %c32] : memref<8x16x48xf32, #tpu.memory_space<vmem>>, vector<8x16x16xf32>
    tpu.vector_store %arg3[%c0_7, %c0_8, %c32], %2 {strides = array<i32>} : memref<8x16x48xf32, #tpu.memory_space<vmem>>, vector<8x16x16xf32>,
    return
  }
  func.func @transform_0(%arg0: i32, %arg1: i32) -> (i32, i32, i32) {
    %c0_i32 = arith.constant 0 : i32
    %c0_i32_0 = arith.constant 0 : i32
    return %arg0, %arg1, %c0_i32 : i32, i32, i32
  }
  func.func @transform_1(%arg0: i32, %arg1: i32) -> (i32, i32, i32) {
    %c0_i32 = arith.constant 0 : i32
    %c0_i32_0 = arith.constant 0 : i32
    return %arg0, %arg1, %c0_i32 : i32, i32, i32
  }
}

</mosaic_0001>

<bundles_post_ra>
// kernel: tpu_custom_call.1
= control target key start
LH: loop header
LB: loop body
LE: loop exit
PB: predicated region body
PF: predicated region fallthrough
CT: control target
= control target key end

     0   :  { %6 = vsyncpa [#allocation3], 0  ;;  %s405_s0 = inlined_call_operand.hbm [shape: f32[8,16,16], index: 0, kind: input, shape index: {}]   ;;  %s406_s1 = inlined_call_operand.hbm [shape: f32[8,16,48], index: 1, kind: output, shape index: {}]  }
   0x1   :  { %7 = vsyncpa [#allocation4], 0  ;;  %s12_s8 = sshll.u32 %s405_s0, 4  ;;  %s297_s9 = smov [#allocation2]   ;;  %s13_s8 = int_to_ptr.hbm [resolvable:$true] %s12_s8 }
   0x2   :  { %s14_s10 = sshll.u32 %s297_s9, 4  ;;  %s298_s11 = smov 128   ;;  %s15_s10 = int_to_ptr.vmem [resolvable:$true] %s14_s10 }
   0x3   :  { %s299_s12 = smov 8  }
   0x4   :  { %20 = dma.hbm_to_vmem [thread:$0]  %s13_s8, 2048, %s15_s10, [#allocation3], %s298_s11, %s298_s11, %s299_s12  }
   0x5   :  { %293 = dma.done.wait [#allocation3], 2048  }
   0x6   :  { %294 = vsyncadd [#allocation3], 4294965248  ;;  %v27_v0 = vld [vmem:[#allocation2 + $0x10] sm:$0xff]  ;;  %v25_v1 = vld [vmem:[#allocation2] sm:$0xff]  ;;  %s300_s13 = smov 16   ;;  %s301_s0 = smov 32  }
   0x7   :  { %v43_v2 = vmul.f32 255.0, %v27_v0  ;;  %v41_v3 = vmul.f32 255.0, %v25_v1  ;;  %v29_v4 = vld [vmem:[#allocation2 + $0x20] sm:$0xff]  ;;  %v28_v6 = vld [vmem:[#allocation2 + $0x18] sm:$0xff]  ;;  %v26_v7 = vld [vmem:[#allocation2 + $0x8] sm:$0xff]  ;;  %vm57_vm0 = vcmask 130048  }
   0x8   :  { %v45_v5 = vmul.f32 255.0, %v29_v4  ;;  %v30_v8 = vld [vmem:[#allocation2 + $0x28] sm:$0xff]  ;;  %v44_v9 = vmul.f32 255.0, %v28_v6  ;;  %v42_v10 = vmul.f32 255.0, %v26_v7  ;;  %v32_v12 = vld [vmem:[#allocation2 + $0x38] sm:$0xff]  ;;  %v31_v13 = vld [vmem:[#allocation2 + $0x30] sm:$0xff] }
   0x9   :  { %94 = vrot.lane.b32.xlu1 %v43_v2, %s300_s13  ;;  %90 = vrot.lane.b32.xlu0 %v41_v3, %s300_s13  ;;  %v46_v11 = vmul.f32 255.0, %v30_v8  ;;  %v33_v14 = vld [vmem:[#allocation2 + $0x40] sm:$0xff]  ;;  %v48_v15 = vmul.f32 255.0, %v32_v12  ;;  %v47_v16 = vmul.f32 255.0, %v31_v13  ;;  %v35_v18 = vld [vmem:[#allocation2 + $0x50] sm:$0xff]  ;;  %v34_v19 = vld [vmem:[#allocation2 + $0x48] sm:$0xff] }
   0xa   :  { %98 = vrot.lane.b32.xlu2 %v45_v5, %s300_s13  ;;  %v49_v17 = vmul.f32 255.0, %v33_v14  ;;  %v36_v20 = vld [vmem:[#allocation2 + $0x58] sm:$0xff]  ;;  %v51_v21 = vmul.f32 255.0, %v35_v18  ;;  %v50_v22 = vmul.f32 255.0, %v34_v19  ;;  %v38_v24 = vld [vmem:[#allocation2 + $0x68] sm:$0xff]  ;;  %v37_v25 = vld [vmem:[#allocation2 + $0x60] sm:$0xff] }
   0xb   :  { %v52_v23 = vmul.f32 255.0, %v36_v20  ;;  %v39_v26 = vld [vmem:[#allocation2 + $0x70] sm:$0xff]  ;;  %v54_v27 = vmul.f32 255.0, %v38_v24  ;;  %v53_v28 = vmul.f32 255.0, %v37_v25  ;;  %v40_v30 = vld [vmem:[#allocation2 + $0x78] sm:$0xff]  ;;  %60 = vst.msk [vmem:[#allocation5 + $0x10] sm:$0xff] %vm57_vm0, %v43_v2 }
   0xc   :  { %v55_v29 = vmul.f32 255.0, %v39_v26  ;;  %v56_v31 = vmul.f32 255.0, %v40_v30  ;;  %58 = vst.msk [vmem:[#allocation5] sm:$0xff] %vm57_vm0, %v41_v3  ;;  %vm138_vm1 = vcmask 261248   ;;  %vm203_vm2 = vcmask 392448   ;;  %s302_s14 = smov [#allocation5]  }
   0xd   :  { %59 = vst.msk [vmem:[#allocation5 + $0x8] sm:$0xff] %vm57_vm0, %v42_v10  ;;  %s224_s15 = sshll.u32 %s302_s14, 4  ;;  %s226_s18 = sshll.u32 %s406_s1, 4  ;;  %s225_s15 = int_to_ptr.vmem [resolvable:$true] %s224_s15  ;;  %s227_s18 = int_to_ptr.hbm [resolvable:$true] %s226_s18 }
   0xe   :  { %61 = vst.msk [vmem:[#allocation5 + $0x18] sm:$0xff] %vm57_vm0, %v44_v9 }
   0xf   :  { %62 = vst.msk [vmem:[#allocation5 + $0x20] sm:$0xff] %vm57_vm0, %v45_v5 }
  0x10   :  { %63 = vst.msk [vmem:[#allocation5 + $0x28] sm:$0xff] %vm57_vm0, %v46_v11 }
  0x11   :  { %96 = vrot.lane.b32.xlu1 %v44_v9, %s300_s13  ;;  %92 = vrot.lane.b32.xlu0 %v42_v10, %s300_s13  ;;  %64 = vst.msk [vmem:[#allocation5 + $0x30] sm:$0xff] %vm57_vm0, %v47_v16 }
  0x12   :  { %100 = vrot.lane.b32.xlu2 %v46_v11, %s300_s13  ;;  %65 = vst.msk [vmem:[#allocation5 + $0x38] sm:$0xff] %vm57_vm0, %v48_v15 }
  0x13   :  { %66 = vst.msk [vmem:[#allocation5 + $0x40] sm:$0xff] %vm57_vm0, %v49_v17 }
  0x14   :  { %67 = vst.msk [vmem:[#allocation5 + $0x48] sm:$0xff] %vm57_vm0, %v50_v22 }
  0x15   :  { %68 = vst.msk [vmem:[#allocation5 + $0x50] sm:$0xff] %vm57_vm0, %v51_v21 }
  0x16   :  { %69 = vst.msk [vmem:[#allocation5 + $0x58] sm:$0xff] %vm57_vm0, %v52_v23 }
  0x17   :  { %70 = vst.msk [vmem:[#allocation5 + $0x60] sm:$0xff] %vm57_vm0, %v53_v28 }
  0x18   :  { %71 = vst.msk [vmem:[#allocation5 + $0x68] sm:$0xff] %vm57_vm0, %v54_v27 }
  0x19   :  { %104 = vrot.lane.b32.xlu1 %v48_v15, %s300_s13  ;;  %102 = vrot.lane.b32.xlu0 %v47_v16, %s300_s13  ;;  %72 = vst.msk [vmem:[#allocation5 + $0x70] sm:$0xff] %vm57_vm0, %v55_v29 }
  0x1a   :  { %106 = vrot.lane.b32.xlu2 %v49_v17, %s300_s13  ;;  %73 = vst.msk [vmem:[#allocation5 + $0x78] sm:$0xff] %vm57_vm0, %v56_v31 }
  0x21   :  { %110 = vrot.lane.b32.xlu1 %v51_v21, %s300_s13  ;;  %108 = vrot.lane.b32.xlu0 %v50_v22, %s300_s13 }
  0x22   :  { %112 = vrot.lane.b32.xlu2 %v52_v23, %s300_s13 }
  0x29   :  { %116 = vrot.lane.b32.xlu1 %v54_v27, %s300_s13  ;;  %114 = vrot.lane.b32.xlu0 %v53_v28, %s300_s13 }
  0x2a   :  { %118 = vrot.lane.b32.xlu2 %v55_v29, %s300_s13 }
  0x31   :  { %155 = vrot.lane.b32.xlu1 %v41_v3, %s301_s0  ;;  %120 = vrot.lane.b32.xlu0 %v56_v31, %s300_s13 }
  0x32   :  { %157 = vrot.lane.b32.xlu2 %v42_v10, %s301_s0 }
  0x39   :  { %161 = vrot.lane.b32.xlu1 %v44_v9, %s301_s0  ;;  %159 = vrot.lane.b32.xlu0 %v43_v2, %s301_s0 }
  0x3a   :  { %163 = vrot.lane.b32.xlu2 %v45_v5, %s301_s0 }
  0x41   :  { %167 = vrot.lane.b32.xlu1 %v47_v16, %s301_s0  ;;  %165 = vrot.lane.b32.xlu0 %v46_v11, %s301_s0 }
  0x42   :  { %169 = vrot.lane.b32.xlu2 %v48_v15, %s301_s0 }
  0x49   :  { %173 = vrot.lane.b32.xlu1 %v50_v22, %s301_s0  ;;  %171 = vrot.lane.b32.xlu0 %v49_v17, %s301_s0 }
  0x4a   :  { %175 = vrot.lane.b32.xlu2 %v51_v21, %s301_s0 }
  0x51   :  { %179 = vrot.lane.b32.xlu1 %v53_v28, %s301_s0  ;;  %177 = vrot.lane.b32.xlu0 %v52_v23, %s301_s0 }
  0x52   :  { %181 = vrot.lane.b32.xlu2 %v54_v27, %s301_s0 }
  0x59   :  { %185 = vrot.lane.b32.xlu1 %v56_v31, %s301_s0  ;;  %183 = vrot.lane.b32.xlu0 %v55_v29, %s301_s0 }
  0x64   :  { %v99_v32 = vpop.permute.xlu2 %98 }
  0x65   :  { %143 = vst.msk [vmem:[#allocation5 + $0x20] sm:$0xff] %vm138_vm1, %v99_v32 }
  0x6c   :  { %v101_v33 = vpop.permute.xlu2 %100 }
  0x6d   :  { %144 = vst.msk [vmem:[#allocation5 + $0x28] sm:$0xff] %vm138_vm1, %v101_v33 }
  0x74   :  { %v107_v34 = vpop.permute.xlu2 %106 }
  0x75   :  { %147 = vst.msk [vmem:[#allocation5 + $0x40] sm:$0xff] %vm138_vm1, %v107_v34 }
  0x7b   :  { %v95_v35 = vpop.permute.xlu1 %94  ;;  %v91_v36 = vpop.permute.xlu0 %90 }
  0x7c   :  { %141 = vst.msk [vmem:[#allocation5 + $0x10] sm:$0xff] %vm138_vm1, %v95_v35  ;;  %v113_v37 = vpop.permute.xlu2 %112 }
  0x7d   :  { %139 = vst.msk [vmem:[#allocation5] sm:$0xff] %vm138_vm1, %v91_v36 }
  0x7e   :  { %150 = vst.msk [vmem:[#allocation5 + $0x58] sm:$0xff] %vm138_vm1, %v113_v37 }
  0x83   :  { %v97_v38 = vpop.permute.xlu1 %96  ;;  %v93_v39 = vpop.permute.xlu0 %92 }
  0x84   :  { %142 = vst.msk [vmem:[#allocation5 + $0x18] sm:$0xff] %vm138_vm1, %v97_v38  ;;  %v119_v40 = vpop.permute.xlu2 %118 }
  0x85   :  { %140 = vst.msk [vmem:[#allocation5 + $0x8] sm:$0xff] %vm138_vm1, %v93_v39 }
  0x86   :  { %153 = vst.msk [vmem:[#allocation5 + $0x70] sm:$0xff] %vm138_vm1, %v119_v40 }
  0x8b   :  { %v105_v41 = vpop.permute.xlu1 %104  ;;  %v103_v42 = vpop.permute.xlu0 %102 }
  0x8c   :  { %146 = vst.msk [vmem:[#allocation5 + $0x38] sm:$0xff] %vm138_vm1, %v105_v41  ;;  %v158_v43 = vpop.permute.xlu2 %157 }
  0x8d   :  { %145 = vst.msk [vmem:[#allocation5 + $0x30] sm:$0xff] %vm138_vm1, %v103_v42 }
  0x8e   :  { %205 = vst.msk [vmem:[#allocation5 + $0x8] sm:$0xff] %vm203_vm2, %v158_v43 }
  0x93   :  { %v111_v44 = vpop.permute.xlu1 %110  ;;  %v109_v45 = vpop.permute.xlu0 %108 }
  0x94   :  { %149 = vst.msk [vmem:[#allocation5 + $0x50] sm:$0xff] %vm138_vm1, %v111_v44  ;;  %v164_v46 = vpop.permute.xlu2 %163 }
  0x95   :  { %148 = vst.msk [vmem:[#allocation5 + $0x48] sm:$0xff] %vm138_vm1, %v109_v45 }
  0x96   :  { %208 = vst.msk [vmem:[#allocation5 + $0x20] sm:$0xff] %vm203_vm2, %v164_v46 }
  0x9b   :  { %v117_v47 = vpop.permute.xlu1 %116  ;;  %v115_v48 = vpop.permute.xlu0 %114 }
  0x9c   :  { %152 = vst.msk [vmem:[#allocation5 + $0x68] sm:$0xff] %vm138_vm1, %v117_v47  ;;  %v170_v49 = vpop.permute.xlu2 %169 }
  0x9d   :  { %151 = vst.msk [vmem:[#allocation5 + $0x60] sm:$0xff] %vm138_vm1, %v115_v48 }
  0x9e   :  { %211 = vst.msk [vmem:[#allocation5 + $0x38] sm:$0xff] %vm203_vm2, %v170_v49 }
  0xa3   :  { %v156_v50 = vpop.permute.xlu1 %155  ;;  %v121_v51 = vpop.permute.xlu0 %120 }
  0xa4   :  { %204 = vst.msk [vmem:[#allocation5] sm:$0xff] %vm203_vm2, %v156_v50  ;;  %v176_v52 = vpop.permute.xlu2 %175 }
  0xa5   :  { %154 = vst.msk [vmem:[#allocation5 + $0x78] sm:$0xff] %vm138_vm1, %v121_v51 }
  0xa6   :  { %214 = vst.msk [vmem:[#allocation5 + $0x50] sm:$0xff] %vm203_vm2, %v176_v52 }
  0xab   :  { %v162_v53 = vpop.permute.xlu1 %161  ;;  %v160_v54 = vpop.permute.xlu0 %159 }
  0xac   :  { %207 = vst.msk [vmem:[#allocation5 + $0x18] sm:$0xff] %vm203_vm2, %v162_v53  ;;  %v182_v55 = vpop.permute.xlu2 %181 }
  0xad   :  { %206 = vst.msk [vmem:[#allocation5 + $0x10] sm:$0xff] %vm203_vm2, %v160_v54 }
  0xae   :  { %217 = vst.msk [vmem:[#allocation5 + $0x68] sm:$0xff] %vm203_vm2, %v182_v55 }
  0xb3   :  { %v168_v56 = vpop.permute.xlu1 %167  ;;  %v166_v57 = vpop.permute.xlu0 %165 }
  0xb4   :  { %210 = vst.msk [vmem:[#allocation5 + $0x30] sm:$0xff] %vm203_vm2, %v168_v56 }
  0xb5   :  { %209 = vst.msk [vmem:[#allocation5 + $0x28] sm:$0xff] %vm203_vm2, %v166_v57 }
  0xbb   :  { %v174_v58 = vpop.permute.xlu1 %173  ;;  %v172_v59 = vpop.permute.xlu0 %171 }
  0xbc   :  { %213 = vst.msk [vmem:[#allocation5 + $0x48] sm:$0xff] %vm203_vm2, %v174_v58 }
  0xbd   :  { %212 = vst.msk [vmem:[#allocation5 + $0x40] sm:$0xff] %vm203_vm2, %v172_v59 }
  0xc3   :  { %v180_v60 = vpop.permute.xlu1 %179  ;;  %v178_v61 = vpop.permute.xlu0 %177 }
  0xc4   :  { %216 = vst.msk [vmem:[#allocation5 + $0x60] sm:$0xff] %vm203_vm2, %v180_v60 }
  0xc5   :  { %215 = vst.msk [vmem:[#allocation5 + $0x58] sm:$0xff] %vm203_vm2, %v178_v61 }
  0xcb   :  { %v186_v62 = vpop.permute.xlu1 %185  ;;  %v184_v63 = vpop.permute.xlu0 %183 }
  0xcc   :  { %219 = vst.msk [vmem:[#allocation5 + $0x78] sm:$0xff] %vm203_vm2, %v186_v62 }
  0xcd   :  { %218 = vst.msk [vmem:[#allocation5 + $0x70] sm:$0xff] %vm203_vm2, %v184_v63 }
  0xce   :  { %232 = dma.vmem_to_hbm [thread:$0]  %s225_s15, 2048, %s227_s18, [#allocation4], %s298_s11, %s298_s11, %s299_s12  }
  0xcf   :  { %295 = dma.done.wait [#allocation4], 2048  }
  0xd0   :  { %296 = vsyncadd [#allocation4], 4294965248 }
  0xd1   :  { %237 = vsyncpa [#allocation3], 1 }
  0xd2   :  { %238 = vsyncpa [#allocation4], 1 }

</bundles_post_ra>
